<compile_context>
chip_gen: v7x
topology: tpu7x:2x2x1
jax: 0.10.0
libtpu: 0.0.40
codegen_flags: <defaults>
</compile_context>

<pallas_src>
import functools
import math

import jax
import jax.numpy as jnp
from jax.experimental import pallas as pl
from jax.experimental.pallas import tpu as pltpu

LANES = 128
SUBLANES = 8
# 4096 rows x 128 lanes x 4 B = 2 MiB per f32 input block.
# Working set (2 inputs x 2 buffers x 2 MiB + outputs) stays well under the
# 32 MiB scoped-VMEM default on every generation (v5e/v6e/v7x).
MAX_BLOCK_ROWS = 4096


def _cauchy_partial_sum_kernel(x_ref, t_ref, out_ref, *, gamma, inv_gamma):
    """Per block: loss = gamma*log(1 + d^2 * inv_gamma); write (8,128) partial sum."""
    d = x_ref[...].astype(jnp.float32) - t_ref[...].astype(jnp.float32)
    loss = gamma * jnp.log(1.0 + (d * d) * inv_gamma)
    block_rows = loss.shape[0]
    # Group-sum over the leading axis only: pure VPU vreg adds, (8,128) result.
    # The tiny cross-lane / cross-block reduction is finished outside the kernel.
    partial = loss.reshape(block_rows // SUBLANES, SUBLANES, LANES).sum(axis=0)
    out_ref[...] = partial


def _cauchy_elementwise_kernel(x_ref, t_ref, out_ref, *, gamma, inv_gamma):
    d = x_ref[...].astype(jnp.float32) - t_ref[...].astype(jnp.float32)
    out_ref[...] = (gamma * jnp.log(1.0 + (d * d) * inv_gamma)).astype(out_ref.dtype)


def _slab_layout(n):
    """Choose (block_rows, padded_rows) for a flat length-n tensor."""
    rows = (n + LANES - 1) // LANES
    rows8 = ((rows + SUBLANES - 1) // SUBLANES) * SUBLANES
    if rows8 <= MAX_BLOCK_ROWS:
        return rows8, rows8
    padded_rows = ((rows8 + MAX_BLOCK_ROWS - 1) // MAX_BLOCK_ROWS) * MAX_BLOCK_ROWS
    return MAX_BLOCK_ROWS, padded_rows


def _to_slab(x, padded_rows):
    """Flatten to (padded_rows, 128).  Skips jnp.pad when already aligned."""
    flat = x.reshape(-1)
    n = flat.shape[0]
    padded_n = padded_rows * LANES
    if padded_n != n:  # static Python check -> no extra HBM pass when aligned
        # TODO(synk): for misaligned sizes the tail could be masked in-kernel
        # instead of padding, to avoid this extra copy.
        flat = jnp.pad(flat, (0, padded_n - n))
    return flat.reshape(padded_rows, LANES)


def cauchy_loss(inp, target, gamma=1.0, reduction="mean"):
    """JAX/Pallas equivalent of CauchyLoss.forward."""
    assert inp.shape == target.shape
    orig_shape = inp.shape
    n = math.prod(orig_shape)

    block_rows, padded_rows = _slab_layout(n)
    grid = (padded_rows // block_rows,)
    x2d = _to_slab(inp, padded_rows)
    t2d = _to_slab(target, padded_rows)

    gamma_f = float(gamma)
    inv_gamma = 1.0 / gamma_f

    compiler_params = pltpu.CompilerParams(
        dimension_semantics=("parallel",),      # independent blocks; megacore on v7x
        vmem_limit_bytes=32 * 1024 * 1024,      # explicit, safe on v5e/v6e/v7x
    )
    in_specs = [
        pl.BlockSpec((block_rows, LANES), lambda i: (i, 0)),
        pl.BlockSpec((block_rows, LANES), lambda i: (i, 0)),
    ]

    if reduction in ("mean", "sum"):
        kernel = functools.partial(
            _cauchy_partial_sum_kernel, gamma=gamma_f, inv_gamma=inv_gamma
        )
        # Padding elements have diff == 0 -> log(1) == 0, so they do not affect
        # the sum.
        partials = pl.pallas_call(
            kernel,
            out_shape=jax.ShapeDtypeStruct((grid[0] * SUBLANES, LANES), jnp.float32),
            grid_spec=pltpu.PrefetchScalarGridSpec(
                num_scalar_prefetch=0,
                grid=grid,
                in_specs=in_specs,
                out_specs=pl.BlockSpec((SUBLANES, LANES), lambda i: (i, 0)),
            ),
            compiler_params=compiler_params,
        )(x2d, t2d)
        total = jnp.sum(partials)               # tiny final reduce outside kernel
        if reduction == "mean":
            total = total / jnp.float32(n)
        return total
    else:  # reduction == 'none'
        kernel = functools.partial(
            _cauchy_elementwise_kernel, gamma=gamma_f, inv_gamma=inv_gamma
        )
        out2d = pl.pallas_call(
            kernel,
            out_shape=jax.ShapeDtypeStruct((padded_rows, LANES), inp.dtype),
            grid_spec=pltpu.PrefetchScalarGridSpec(
                num_scalar_prefetch=0,
                grid=grid,
                in_specs=in_specs,
                out_specs=pl.BlockSpec((block_rows, LANES), lambda i: (i, 0)),
            ),
            compiler_params=compiler_params,
        )(x2d, t2d)
        if padded_rows * LANES != n:            # static check: slice only if padded
            return out2d.reshape(-1)[:n].reshape(orig_shape)
        return out2d.reshape(orig_shape)


if __name__ == "__main__":
    key = jax.random.PRNGKey(0)
    k1, k2, k3, k4 = jax.random.split(key, 4)

    gamma = 1.0

    # Aligned small shape (2*4*16*16 = 2048 elements -> no padding path).
    x = jax.random.normal(k1, (2, 4, 16, 16), dtype=jnp.float32)
    y = jax.random.normal(k2, (2, 4, 16, 16), dtype=jnp.float32)

    out_mean = jax.block_until_ready(cauchy_loss(x, y, gamma=gamma, reduction="mean"))
    out_sum = jax.block_until_ready(cauchy_loss(x, y, gamma=gamma, reduction="sum"))
    out_none = jax.block_until_ready(cauchy_loss(x, y, gamma=gamma, reduction="none"))

    diffs = x - y
    ref_elem = gamma * jnp.log(1.0 + diffs**2 / gamma)
    assert jnp.allclose(out_mean, ref_elem.mean(), rtol=1e-5, atol=1e-5)
    assert jnp.allclose(out_sum, ref_elem.sum(), rtol=1e-5, atol=1e-4)
    assert out_none.shape == x.shape
    assert jnp.allclose(out_none, ref_elem, rtol=1e-5, atol=1e-5)

    # Misaligned small shape (3*5*7 = 105 elements -> exercises the tail-pad path).
    a = jax.random.normal(k3, (3, 5, 7), dtype=jnp.float32)
    b = jax.random.normal(k4, (3, 5, 7), dtype=jnp.float32)
    ref2 = gamma * jnp.log(1.0 + (a - b) ** 2 / gamma)
    m2 = jax.block_until_ready(cauchy_loss(a, b, gamma=gamma, reduction="mean"))
    n2 = jax.block_until_ready(cauchy_loss(a, b, gamma=gamma, reduction="none"))
    assert jnp.allclose(m2, ref2.mean(), rtol=1e-5, atol=1e-5)
    assert jnp.allclose(n2, ref2, rtol=1e-5, atol=1e-5)

    print("KERNEL_OK")
</pallas_src>

<mosaic_0001>
module attributes {stable_mosaic.version = 11 : i64} {
  func.func @_cauchy_partial_sum_kernel(%arg0: i32, %arg1: memref<16x128xf32, #tpu.memory_space<vmem>>, %arg2: memref<16x128xf32, #tpu.memory_space<vmem>>, %arg3: memref<8x128xf32, #tpu.memory_space<vmem>>) attributes {dimension_semantics = [#tpu.dimension_semantics<parallel>], iteration_bounds = array<i64: 1>, scalar_prefetch = 0 : i64, scratch_operands = 0 : i64, tpu.core_type = #tpu.core_type<tc>, window_params = [{transform_indices = @transform_0, window_bounds = array<i64: 16, 128>}, {transform_indices = @transform_1, window_bounds = array<i64: 16, 128>}, {transform_indices = @transform_2, window_bounds = array<i64: 8, 128>}]} {
    %c0 = arith.constant 0 : index
    %c0_0 = arith.constant 0 : index
    %0 = vector.load %arg1[%c0, %c0_0] : memref<16x128xf32, #tpu.memory_space<vmem>>, vector<16x128xf32>
    %c0_1 = arith.constant 0 : index
    %c0_2 = arith.constant 0 : index
    %1 = vector.load %arg2[%c0_1, %c0_2] : memref<16x128xf32, #tpu.memory_space<vmem>>, vector<16x128xf32>
    %2 = arith.subf %0, %1 : vector<16x128xf32>
    %3 = arith.mulf %2, %2 : vector<16x128xf32>
    %cst = arith.constant 1.000000e+00 : f32
    %4 = vector.broadcast %cst : f32 to vector<16x128xf32>
    %5 = arith.mulf %3, %4 : vector<16x128xf32>
    %cst_3 = arith.constant 1.000000e+00 : f32
    %6 = vector.broadcast %cst_3 : f32 to vector<16x128xf32>
    %7 = arith.addf %6, %5 : vector<16x128xf32>
    %8 = math.log %7 : vector<16x128xf32>
    %cst_4 = arith.constant 1.000000e+00 : f32
    %9 = vector.broadcast %cst_4 : f32 to vector<16x128xf32>
    %10 = arith.mulf %9, %8 : vector<16x128xf32>
    %11 = vector.shape_cast %10 : vector<16x128xf32> to vector<2x8x128xf32>
    %cst_5 = arith.constant dense<0.000000e+00> : vector<8x128xf32>
    %12 = vector.multi_reduction <add>, %11, %cst_5 [0] : vector<2x8x128xf32> to vector<8x128xf32>
    %c0_6 = arith.constant 0 : index
    %c0_7 = arith.constant 0 : index
    %13 = vector.load %arg3[%c0_6, %c0_7] : memref<8x128xf32, #tpu.memory_space<vmem>>, vector<8x128xf32>
    tpu.vector_store %arg3[%c0_6, %c0_7], %12 {strides = array<i32>} : memref<8x128xf32, #tpu.memory_space<vmem>>, vector<8x128xf32>,
    return
  }
  func.func @transform_0(%arg0: i32) -> (i32, i32) {
    %c0_i32 = arith.constant 0 : i32
    %c0_i32_0 = arith.constant 0 : i32
    return %arg0, %c0_i32 : i32, i32
  }
  func.func @transform_1(%arg0: i32) -> (i32, i32) {
    %c0_i32 = arith.constant 0 : i32
    %c0_i32_0 = arith.constant 0 : i32
    return %arg0, %c0_i32 : i32, i32
  }
  func.func @transform_2(%arg0: i32) -> (i32, i32) {
    %c0_i32 = arith.constant 0 : i32
    %c0_i32_0 = arith.constant 0 : i32
    return %arg0, %c0_i32 : i32, i32
  }
}

</mosaic_0001>

<bundles_post_ra>
// kernel: tpu_custom_call.1
= control target key start
LH: loop header
LB: loop body
LE: loop exit
PB: predicated region body
PF: predicated region fallthrough
CT: control target
= control target key end

     0   :  { %7 = vsyncpa [#allocation3], 0  ;;  %s209_s0 = inlined_call_operand.hbm [shape: f32[16,128], index: 0, kind: input, shape index: {}]   ;;  %s210_s1 = inlined_call_operand.hbm [shape: f32[16,128], index: 1, kind: input, shape index: {}]   ;;  %s211_s2 = inlined_call_operand.hbm [shape: f32[8,128], index: 2, kind: output, shape index: {}]  }
   0x1   :  { %8 = vsyncpa [#allocation6], 0 }
   0x2   :  { %9 = vsyncpa [#allocation4], 0  ;;  %s153_s9 = smov [#allocation2]   ;;  %s81_s13 = scalar_lea.hbm %s209_s0, 256 }
   0x3   :  { %s15_s10 = sshll.u32 %s153_s9, 4  ;;  %p82_p0 = scmp.ne.s32.totalorder %s209_s0, %s81_s13  ;;  %s16_s10 = int_to_ptr.vmem [resolvable:$true] %s15_s10 }
   0x4   :  { %p85_p1 = scmp.lt.u32.totalorder %s81_s13, %s209_s0 }
   0x6   :  { %p87_p2 = pnand %p85_p1, %p82_p0 }
   0x8   :  { %90 = shalt.err (!%p87_p2)
}
   0x9   :  { %s91_s18 = scalar_lea.vmem %s16_s10, 256  ;;  %p96_p4 = scmp.lt.s32.totalorder %s16_s10, %s16_s10 }
   0xa   :  { %p92_p3 = scmp.ne.s32.totalorder %s16_s10, %s91_s18  ;;  %p97_p5 = scmp.lt.s32.totalorder %s91_s18, %s91_s18 }
   0xc   :  { %p98_p6 = por %p97_p5, %p96_p4 }
   0xe   :  { %p99_p7 = pnand %p98_p6, %p92_p3 }
  0x10   :  { %102 = shalt.err (!%p99_p7)
}
  0x11   :  { %s154_s19 = smov 128   ;;  %s155_s20 = smov 8  }
  0x12   :  { %21 = dma.hbm_to_vmem [thread:$0]  %s209_s0, 256, %s16_s10, [#allocation3], %s154_s19, %s154_s19, %s155_s20  }
  0x13   :  { %s156_s23 = smov [#allocation5]   ;;  %s103_s27 = scalar_lea.hbm %s210_s1, 256 }
  0x14   :  { %s27_s24 = sshll.u32 %s156_s23, 4  ;;  %p104_p8 = scmp.ne.s32.totalorder %s210_s1, %s103_s27  ;;  %s28_s24 = int_to_ptr.vmem [resolvable:$true] %s27_s24 }
  0x15   :  { %p107_p9 = scmp.lt.u32.totalorder %s103_s27, %s210_s1 }
  0x17   :  { %p109_p10 = pnand %p107_p9, %p104_p8 }
  0x19   :  { %112 = shalt.err (!%p109_p10)
}
  0x1a   :  { %s113_s4 = scalar_lea.vmem %s28_s24, 256  ;;  %p118_p12 = scmp.lt.s32.totalorder %s28_s24, %s28_s24 }
  0x1b   :  { %p114_p11 = scmp.ne.s32.totalorder %s28_s24, %s113_s4  ;;  %p119_p13 = scmp.lt.s32.totalorder %s113_s4, %s113_s4 }
  0x1d   :  { %p120_p0 = por %p119_p13, %p118_p12 }
  0x1f   :  { %p121_p1 = pnand %p120_p0, %p114_p11 }
  0x21   :  { %124 = shalt.err (!%p121_p1)
}
  0x22   :  { %33 = dma.hbm_to_vmem [thread:$0]  %s210_s1, 256, %s28_s24, [#allocation6], %s154_s19, %s154_s19, %s155_s20  }
  0x23   :  { %147 = dma.done.wait [#allocation3], 256  }
  0x24   :  { %148 = vsyncadd [#allocation3], 4294967040 }
  0x25   :  { %149 = dma.done.wait [#allocation6], 256  }
  0x26   :  { %150 = vsyncadd [#allocation6], 4294967040  ;;  %v40_v0 = vld [vmem:[#allocation2] sm:$0xff]  ;;  %v41_v1 = vld [vmem:[#allocation2 + $0x8] sm:$0xff]  ;;  %s157_s1 = smov [#allocation7]  }
  0x27   :  { %v42_v2 = vld [vmem:[#allocation5] sm:$0xff]  ;;  %v43_v3 = vld [vmem:[#allocation5 + $0x8] sm:$0xff]  ;;  %s62_s6 = sshll.u32 %s157_s1, 4  ;;  %s63_s6 = int_to_ptr.vmem [resolvable:$true] %s62_s6 }
  0x28   :  { %v44_v4 = vsub.f32 %v40_v0, %v42_v2  ;;  %v45_v5 = vsub.f32 %v41_v1, %v43_v3  ;;  %s125_s7 = scalar_lea.vmem %s63_s6, 128  ;;  %p130_p3 = scmp.lt.s32.totalorder %s63_s6, %s63_s6 }
  0x29   :  { %p126_p2 = scmp.ne.s32.totalorder %s63_s6, %s125_s7  ;;  %p131_p4 = scmp.lt.s32.totalorder %s125_s7, %s125_s7 }
  0x2a   :  { %v46_v6 = vmul.f32 %v44_v4, %v44_v4  ;;  %v47_v7 = vmul.f32 %v45_v5, %v45_v5 }
  0x2b   :  { %p132_p5 = por %p131_p4, %p130_p3 }
  0x2c   :  { %v48_v8 = vadd.f32 1.0, %v46_v6  ;;  %v49_v9 = vadd.f32 1.0, %v47_v7 }
  0x2d   :  { %p133_p6 = pnand %p132_p5, %p126_p2 }
  0x2e   :  { %77 = vlog2.f32 %v48_v8 }
  0x2f   :  { %79 = vlog2.f32 %v49_v9 }
  0x38   :  { %v78_v10 = vpop.eup %77 }
  0x39   :  { %v80_v11 = vpop.eup %79  ;;  %v51_v12 = vmul.f32 0.6931472, %v78_v10 }
  0x3a   :  { %v53_v13 = vmul.f32 0.6931472, %v80_v11 }
  0x3c   :  { %v54_v14 = vadd.f32 %v53_v13, %v51_v12 }
  0x3e   :  { %55 = vst [vmem:[#allocation7] sm:$0xff] %v54_v14 }
  0x3f   :  { %136 = shalt.err (!%p133_p6)
}
  0x40   :  { %s137_s10 = scalar_lea.hbm %s211_s2, 128 }
  0x41   :  { %p138_p7 = scmp.ne.s32.totalorder %s211_s2, %s137_s10  ;;  %p141_p8 = scmp.lt.u32.totalorder %s137_s10, %s211_s2 }
  0x43   :  { %p143_p9 = pnand %p141_p8, %p138_p7 }
  0x45   :  { %146 = shalt.err (!%p143_p9)
}
  0x46   :  { %65 = dma.vmem_to_hbm [thread:$0]  %s63_s6, 128, %s211_s2, [#allocation4]  }
  0x47   :  { %151 = dma.done.wait [#allocation4], 128  }
  0x48   :  { %152 = vsyncadd [#allocation4], 4294967168 }
  0x49   :  { %69 = vsyncpa [#allocation3], 1 }
  0x4a   :  { %70 = vsyncpa [#allocation6], 1 }
  0x4b   :  { %71 = vsyncpa [#allocation4], 1 }

</bundles_post_ra>
